<compile_context>
chip_gen: v7x
topology: tpu7x:2x2x1
jax: 0.10.0
libtpu: 0.0.40
codegen_flags: <defaults>
</compile_context>

<pallas_src>
import functools

import jax
import jax.numpy as jnp
import numpy as np
from jax import lax
from jax.experimental import pallas as pl
from jax.experimental.pallas import tpu as pltpu


# ----------------------------------------------------------------------------
# Pallas kernel: one block of `bs` (H, W) slices per grid step.
#   x block : (bs*H, W)  rows of consecutive slices (same HBM layout as input)
#   ml      : (H, H)     row-window-sum + replicate-pad operator (input dtype)
#   mr      : (W, W)     col-window + replicate-pad operator, f32, 1/(k1*k2)
#   o block : (bs*H, W)
# ----------------------------------------------------------------------------
def _make_avgpool_kernel(bs, h, w):
    def kernel(x_ref, ml_ref, mr_ref, o_ref):
        ml = ml_ref[...]
        mr = mr_ref[...]

        def one_slice(row0):
            x_sl = x_ref[pl.ds(row0, h), :]
            t = jnp.dot(ml, x_sl, preferred_element_type=jnp.float32)
            out = jnp.dot(t, mr, preferred_element_type=jnp.float32)
            o_ref[pl.ds(row0, h), :] = out.astype(o_ref.dtype)

        if bs <= 32:
            # Short fixed trip count: fully unroll for LLO scheduling.
            for i in range(bs):
                one_slice(i * h)
        else:
            def body(i, carry):
                one_slice(pl.multiple_of(i * h, h))
                return carry
            lax.fori_loop(0, bs, body, 0, unroll=4)

    return kernel


# ----------------------------------------------------------------------------
# Static operator construction: plain numpy, cached -> baked constants.
#   (M_left @ X)[i,:]  = sum of X rows in the (replicate-padded) window of i
#   (X @ M_right)[:,j] = window sum over cols of j, scaled by 1/(k1*k2)
# ----------------------------------------------------------------------------
@functools.lru_cache(maxsize=None)
def _build_operators_np(h, w, k1, k2):
    oh, ow = h - k1 + 1, w - k2 + 1
    pad_top = (h - oh) // 2
    pad_left = (w - ow) // 2

    rows = np.arange(h)
    lo_r = np.clip(rows - pad_top, 0, oh - 1)
    m_left = ((rows[None, :] >= lo_r[:, None]) &
              (rows[None, :] < lo_r[:, None] + k1)).astype(np.float32)

    cols = np.arange(w)
    lo_c = np.clip(cols - pad_left, 0, ow - 1)
    m_right = ((cols[:, None] >= lo_c[None, :]) &
               (cols[:, None] < lo_c[None, :] + k2)).astype(np.float32)
    m_right *= 1.0 / float(k1 * k2)
    return m_left, m_right


# ----------------------------------------------------------------------------
# Blocking heuristic with padded-tile VMEM accounting.
# ----------------------------------------------------------------------------
def _divisors(n):
    return [d for d in range(1, n + 1) if n % d == 0]


def _padded_block_bytes(rows, cols, itemsize):
    # VMEM tile footprint: sublane granule 8 rows for f32 (16 bf16, 32 int8),
    # lane granule 128.
    sub = 8 * max(1, 4 // itemsize)
    prows = -(-rows // sub) * sub
    pcols = -(-cols // 128) * 128
    return prows * pcols * itemsize


def _choose_bs(nc, h, w, itemsize):
    """Slices per grid step: budget padded VMEM, dtype-aware sublane alignment,
    bounded in-kernel loop, and >= 2 grid steps (megacore) when possible."""
    sub = 8 * max(1, 4 // itemsize)
    # Legality: block second-to-last dim (bs*h) must be 8-aligned or the full
    # extent; prefer dtype-aligned sublane counts.
    legal = [d for d in _divisors(nc) if (d * h) % 8 == 0 or d == nc]
    aligned = [d for d in legal if (d * h) % sub == 0 or d == nc]
    cands = aligned or legal

    target_block = 2 * 1024 * 1024          # ~2 MiB padded per x block
    fit = [d for d in cands
           if _padded_block_bytes(d * h, w, itemsize) <= target_block
           and d <= 256]                    # bound per-step loop trip count
    if not fit:
        fit = [min(cands, key=lambda d: _padded_block_bytes(d * h, w, itemsize))]
    bs = max(fit)
    if nc // bs < 2:                        # give both v7x TensorCores work
        smaller = [d for d in fit if nc // d >= 2]
        if smaller:
            bs = max(smaller)
    return bs


# ----------------------------------------------------------------------------
# Wrapper: AvgPool2d(kernel_size=(k1,k2), auto_pad=True, fast_imp=False)
# ----------------------------------------------------------------------------
def avg_pool2d(x, kernel_size, fast_imp=False):
    # TODO(synk): fast_imp / base_size dynamic-kernel-size paths unimplemented.
    assert not fast_imp
    if isinstance(kernel_size, int):
        kernel_size = (kernel_size, kernel_size)

    n, c, h, w = x.shape
    dtype = x.dtype

    if kernel_size[0] >= h and kernel_size[1] >= w:
        # adaptive_avg_pool2d(x, 1) branch.
        # TODO(synk): global-mean branch uses plain jnp.mean, not a Pallas kernel.
        return jnp.mean(x, axis=(-2, -1), keepdims=True).astype(dtype)

    k1 = min(h, int(kernel_size[0]))
    k2 = min(w, int(kernel_size[1]))

    nc = n * c
    itemsize = jnp.dtype(dtype).itemsize
    bs = _choose_bs(nc, h, w, itemsize)
    grid = (nc // bs,)

    ml_np, mr_np = _build_operators_np(h, w, k1, k2)
    ml = jnp.asarray(ml_np, dtype=dtype)         # exact 0/1 entries
    mr = jnp.asarray(mr_np, dtype=jnp.float32)   # keep second dot in f32

    x2d = x.reshape(nc * h, w)                   # pure reshape, no HBM relayout

    # VMEM working set: 2x double-buffered x/out blocks + single-buffered
    # operators + per-slice f32 temporaries.
    blk = _padded_block_bytes(bs * h, w, itemsize)
    ws = (4 * blk
          + _padded_block_bytes(h, h, itemsize)
          + _padded_block_bytes(w, w, 4)
          + 2 * _padded_block_bytes(h, w, 4))
    vmem_limit = None
    if ws > 12 * 1024 * 1024:
        vmem_limit = min(int(ws * 3 // 2), 48 * 1024 * 1024)

    flops = nc * (2 * h * h * w + 2 * h * w * w)
    bytes_accessed = 2 * nc * h * w * itemsize + (h * h + w * w) * 4
    cost = pl.CostEstimate(flops=flops, transcendentals=0,
                           bytes_accessed=bytes_accessed)

    out2d = pl.pallas_call(
        _make_avgpool_kernel(bs, h, w),
        out_shape=jax.ShapeDtypeStruct((nc * h, w), dtype),
        grid=grid,
        in_specs=[
            pl.BlockSpec((bs * h, w), lambda i: (i, 0)),
            pl.BlockSpec((h, h), lambda i: (0, 0),
                         pipeline_mode=pl.Buffered(1)),   # constant operand
            pl.BlockSpec((w, w), lambda i: (0, 0),
                         pipeline_mode=pl.Buffered(1)),   # constant operand
        ],
        out_specs=pl.BlockSpec((bs * h, w), lambda i: (i, 0)),
        compiler_params=pltpu.CompilerParams(
            dimension_semantics=("parallel",),
            vmem_limit_bytes=vmem_limit),
        cost_estimate=cost,
    )(x2d, ml, mr)

    return out2d.reshape(n, c, h, w)


# ----------------------------------------------------------------------------
# Pure-JAX reference mirroring the PyTorch forward (for correctness check).
# ----------------------------------------------------------------------------
def _ref_avg_pool2d(x, kernel_size):
    n, c, h, w = x.shape
    k1 = min(h, kernel_size[0])
    k2 = min(w, kernel_size[1])
    s = jnp.cumsum(jnp.cumsum(x, axis=-1), axis=-2)
    s = jnp.pad(s, ((0, 0), (0, 0), (1, 0), (1, 0)))
    s1 = s[:, :, :-k1, :-k2]
    s2 = s[:, :, :-k1, k2:]
    s3 = s[:, :, k1:, :-k2]
    s4 = s[:, :, k1:, k2:]
    out = (s4 + s1 - s2 - s3) / (k1 * k2)
    _h, _w = out.shape[2:]
    pad = ((w - _w) // 2, (w - _w + 1) // 2, (h - _h) // 2, (h - _h + 1) // 2)
    out = jnp.pad(out, ((0, 0), (0, 0), (pad[2], pad[3]), (pad[0], pad[1])),
                  mode="edge")
    return out


if __name__ == "__main__":
    key = jax.random.PRNGKey(0)
    x = jax.random.normal(key, (2, 4, 16, 16), dtype=jnp.float32)
    kernel_size = (4, 4)   # AvgPool2d(kernel_size=4, auto_pad=True, fast_imp=False)

    out = avg_pool2d(x, kernel_size)
    out = jax.block_until_ready(out)

    ref = _ref_avg_pool2d(x, kernel_size)
    np.testing.assert_allclose(np.asarray(out), np.asarray(ref),
                               rtol=1e-5, atol=1e-4)
    assert out.shape == x.shape and out.dtype == x.dtype

    print("KERNEL_OK")
</pallas_src>

<mosaic_0001>
module attributes {stable_mosaic.version = 11 : i64} {
  func.func @kernel(%arg0: i32, %arg1: memref<64x16xf32, #tpu.memory_space<vmem>>, %arg2: memref<16x16xf32, #tpu.memory_space<vmem>>, %arg3: memref<16x16xf32, #tpu.memory_space<vmem>>, %arg4: memref<64x16xf32, #tpu.memory_space<vmem>>) attributes {dimension_semantics = [#tpu.dimension_semantics<parallel>], iteration_bounds = array<i64: 2>, scalar_prefetch = 0 : i64, scratch_operands = 0 : i64, tpu.core_type = #tpu.core_type<tc>, window_params = [{transform_indices = @transform_0, window_bounds = array<i64: 64, 16>}, {pipeline_mode = #tpu.pipeline_mode<synchronous>, transform_indices = @transform_1, window_bounds = array<i64: 16, 16>}, {pipeline_mode = #tpu.pipeline_mode<synchronous>, transform_indices = @transform_2, window_bounds = array<i64: 16, 16>}, {transform_indices = @transform_3, window_bounds = array<i64: 64, 16>}]} {
    %c0 = arith.constant 0 : index
    %c0_0 = arith.constant 0 : index
    %0 = vector.load %arg2[%c0, %c0_0] : memref<16x16xf32, #tpu.memory_space<vmem>>, vector<16x16xf32>
    %c0_1 = arith.constant 0 : index
    %c0_2 = arith.constant 0 : index
    %1 = vector.load %arg3[%c0_1, %c0_2] : memref<16x16xf32, #tpu.memory_space<vmem>>, vector<16x16xf32>
    %c0_3 = arith.constant 0 : index
    %c0_4 = arith.constant 0 : index
    %2 = vector.load %arg1[%c0_3, %c0_4] : memref<64x16xf32, #tpu.memory_space<vmem>>, vector<16x16xf32>
    %cst = arith.constant dense<0.000000e+00> : vector<16x16xf32>
    %3 = tpu.matmul %0, %2, %cst {dimension_numbers = #tpu.dot_dimension_numbers<[1], [0], [0], [1], [0, 0, 1, 1], [], []>} : vector<16x16xf32>, vector<16x16xf32>, vector<16x16xf32> -> vector<16x16xf32>
    %cst_5 = arith.constant dense<0.000000e+00> : vector<16x16xf32>
    %4 = tpu.matmul %3, %1, %cst_5 {dimension_numbers = #tpu.dot_dimension_numbers<[1], [0], [0], [1], [0, 0, 1, 1], [], []>} : vector<16x16xf32>, vector<16x16xf32>, vector<16x16xf32> -> vector<16x16xf32>
    %c0_6 = arith.constant 0 : index
    %c0_7 = arith.constant 0 : index
    %5 = vector.load %arg4[%c0_6, %c0_7] : memref<64x16xf32, #tpu.memory_space<vmem>>, vector<16x16xf32>
    tpu.vector_store %arg4[%c0_6, %c0_7], %4 {strides = array<i32>} : memref<64x16xf32, #tpu.memory_space<vmem>>, vector<16x16xf32>,
    %c16 = arith.constant 16 : index
    %c0_8 = arith.constant 0 : index
    %6 = vector.load %arg1[%c16, %c0_8] : memref<64x16xf32, #tpu.memory_space<vmem>>, vector<16x16xf32>
    %cst_9 = arith.constant dense<0.000000e+00> : vector<16x16xf32>
    %7 = tpu.matmul %0, %6, %cst_9 {dimension_numbers = #tpu.dot_dimension_numbers<[1], [0], [0], [1], [0, 0, 1, 1], [], []>} : vector<16x16xf32>, vector<16x16xf32>, vector<16x16xf32> -> vector<16x16xf32>
    %cst_10 = arith.constant dense<0.000000e+00> : vector<16x16xf32>
    %8 = tpu.matmul %7, %1, %cst_10 {dimension_numbers = #tpu.dot_dimension_numbers<[1], [0], [0], [1], [0, 0, 1, 1], [], []>} : vector<16x16xf32>, vector<16x16xf32>, vector<16x16xf32> -> vector<16x16xf32>
    %c16_11 = arith.constant 16 : index
    %c0_12 = arith.constant 0 : index
    %9 = vector.load %arg4[%c16_11, %c0_12] : memref<64x16xf32, #tpu.memory_space<vmem>>, vector<16x16xf32>
    tpu.vector_store %arg4[%c16_11, %c0_12], %8 {strides = array<i32>} : memref<64x16xf32, #tpu.memory_space<vmem>>, vector<16x16xf32>,
    %c32 = arith.constant 32 : index
    %c0_13 = arith.constant 0 : index
    %10 = vector.load %arg1[%c32, %c0_13] : memref<64x16xf32, #tpu.memory_space<vmem>>, vector<16x16xf32>
    %cst_14 = arith.constant dense<0.000000e+00> : vector<16x16xf32>
    %11 = tpu.matmul %0, %10, %cst_14 {dimension_numbers = #tpu.dot_dimension_numbers<[1], [0], [0], [1], [0, 0, 1, 1], [], []>} : vector<16x16xf32>, vector<16x16xf32>, vector<16x16xf32> -> vector<16x16xf32>
    %cst_15 = arith.constant dense<0.000000e+00> : vector<16x16xf32>
    %12 = tpu.matmul %11, %1, %cst_15 {dimension_numbers = #tpu.dot_dimension_numbers<[1], [0], [0], [1], [0, 0, 1, 1], [], []>} : vector<16x16xf32>, vector<16x16xf32>, vector<16x16xf32> -> vector<16x16xf32>
    %c32_16 = arith.constant 32 : index
    %c0_17 = arith.constant 0 : index
    %13 = vector.load %arg4[%c32_16, %c0_17] : memref<64x16xf32, #tpu.memory_space<vmem>>, vector<16x16xf32>
    tpu.vector_store %arg4[%c32_16, %c0_17], %12 {strides = array<i32>} : memref<64x16xf32, #tpu.memory_space<vmem>>, vector<16x16xf32>,
    %c48 = arith.constant 48 : index
    %c0_18 = arith.constant 0 : index
    %14 = vector.load %arg1[%c48, %c0_18] : memref<64x16xf32, #tpu.memory_space<vmem>>, vector<16x16xf32>
    %cst_19 = arith.constant dense<0.000000e+00> : vector<16x16xf32>
    %15 = tpu.matmul %0, %14, %cst_19 {dimension_numbers = #tpu.dot_dimension_numbers<[1], [0], [0], [1], [0, 0, 1, 1], [], []>} : vector<16x16xf32>, vector<16x16xf32>, vector<16x16xf32> -> vector<16x16xf32>
    %cst_20 = arith.constant dense<0.000000e+00> : vector<16x16xf32>
    %16 = tpu.matmul %15, %1, %cst_20 {dimension_numbers = #tpu.dot_dimension_numbers<[1], [0], [0], [1], [0, 0, 1, 1], [], []>} : vector<16x16xf32>, vector<16x16xf32>, vector<16x16xf32> -> vector<16x16xf32>
    %c48_21 = arith.constant 48 : index
    %c0_22 = arith.constant 0 : index
    %17 = vector.load %arg4[%c48_21, %c0_22] : memref<64x16xf32, #tpu.memory_space<vmem>>, vector<16x16xf32>
    tpu.vector_store %arg4[%c48_21, %c0_22], %16 {strides = array<i32>} : memref<64x16xf32, #tpu.memory_space<vmem>>, vector<16x16xf32>,
    return
  }
  func.func @transform_0(%arg0: i32) -> (i32, i32) {
    %c0_i32 = arith.constant 0 : i32
    %c0_i32_0 = arith.constant 0 : i32
    return %arg0, %c0_i32 : i32, i32
  }
  func.func @transform_1(%arg0: i32) -> (i32, i32) {
    %c0_i32 = arith.constant 0 : i32
    %c0_i32_0 = arith.constant 0 : i32
    %c0_i32_1 = arith.constant 0 : i32
    return %c0_i32, %c0_i32_0 : i32, i32
  }
  func.func @transform_2(%arg0: i32) -> (i32, i32) {
    %c0_i32 = arith.constant 0 : i32
    %c0_i32_0 = arith.constant 0 : i32
    %c0_i32_1 = arith.constant 0 : i32
    return %c0_i32, %c0_i32_0 : i32, i32
  }
  func.func @transform_3(%arg0: i32) -> (i32, i32) {
    %c0_i32 = arith.constant 0 : i32
    %c0_i32_0 = arith.constant 0 : i32
    return %arg0, %c0_i32 : i32, i32
  }
}

</mosaic_0001>

<bundles_post_ra>
// kernel: tpu_custom_call.1
= control target key start
LH: loop header
LB: loop body
LE: loop exit
PB: predicated region body
PF: predicated region fallthrough
CT: control target
= control target key end

     0   :  { %s1064_s12 = smov 0   ;;  %s1124_s0 = inlined_call_operand.vmem [shape: f32[128,16], index: 0, kind: input, shape index: {}]   ;;  %s1125_s1 = inlined_call_operand.vmem [shape: f32[16,16], index: 1, kind: input, shape index: {}]   ;;  %s1126_s2 = inlined_call_operand.vmem [shape: f32[16,16], index: 2, kind: input, shape index: {}]   ;;  %s1127_s3 = inlined_call_operand.vmem [shape: f32[128,16], index: 3, kind: output, shape index: {}]  }
   0x1 LB: > { %s881_s13 = sadd.s32 4294967295, %s1042_s12   ;;  %p885_p0 = scmp.ge.s32.totalorder %s1042_s12, 1  ;;  %s1042_s12 = sphi %s1064_s12, %s13_s12  }
   0x2   : > { %p138_p1 = scmp.lt.s32.totalorder %s1042_s12, 3 }
   0x4   : > { %p139_p2 = pnand %p885_p0, %p138_p1 }
   0x5   : > { %s886_s14 = sshll.u32 (!%p139_p2), %s881_s13, 3  ;;  %v174_v0 = vld [vmem:[%s1125_s1] sm:$0xff] (!%p139_p2)  ;;  %vm180_vm0 = vcmask (!%p139_p2), 130048   ;;  %v177_v2 = vld [vmem:[%s1126_s2 + $0x8] sm:$0xff] (!%p139_p2) }
   0x6   : > { %142 = sbr.rel (%p139_p2) target bundleno = 463 (0x1cf), region = 32  ;;  %v176_v1 = vld [vmem:[%s1126_s2] sm:$0xff] (!%p139_p2)  ;;  %p163_p3 = scmp.lt.s32.totalorder (!%p139_p2), %s886_s14, 15  ;;  %944 = vmatprep.mubr.msk.f32.mxu0 (!%p139_p2), %vm180_vm0, %v174_v0  ;;  %v175_v12 = vld [vmem:[%s1125_s1 + $0x8] sm:$0xff] (!%p139_p2) }
   0x7   : > { %v1000_v3 = vpack.c.bf16 (!%p139_p2), %v177_v2, %v176_v1 }
   0x9   : > { %1001 = vmatprep.subr.bf16.mxu1 (!%p139_p2), %v1000_v3 }
   0xa   : > { %1003 = vmatpush3.bf16.msra.mxu1 (!%p139_p2), %v1000_v3 }
   0xb   : > { %1009 = vmatprep.subr.bf16.mxu1 (!%p139_p2), %v1000_v3 }
   0xd   : > { %s1129_s14 = smov (!%p163_p3, %s886_s14), 15 }
   0xe   : > { %s887_s21 = sshll.u32 %s1129_s14, 3 }
   0xf   : > { %s166_s24 = scalar_lea.vmem %s1124_s0, %s887_s21  ;;  %s172_s29 = scalar_lea.vmem %s1127_s3, %s887_s21 }
  0x10   : > { %v178_v4 = vld [vmem:[%s166_s24] sm:$0xff]  ;;  %v179_v5 = vld [vmem:[%s166_s24 + $0x8] sm:$0xff]  ;;  %v345_v6 = vld [vmem:[%s166_s24 + $0x10] sm:$0xff] }
  0x11   : > { %v996_v7 = vpack.c.bf16 %v179_v5, %v178_v4  ;;  %v346_v8 = vld [vmem:[%s166_s24 + $0x18] sm:$0xff]  ;;  %v505_v10 = vld [vmem:[%s166_s24 + $0x20] sm:$0xff]  ;;  %v506_v11 = vld [vmem:[%s166_s24 + $0x28] sm:$0xff] }
  0x12   : > { %v1004_v9 = vpack.c.bf16 %v346_v8, %v345_v6  ;;  %v1012_v13 = vpack.c.bf16 %v506_v11, %v505_v10  ;;  %v665_v14 = vld [vmem:[%s166_s24 + $0x30] sm:$0xff]  ;;  %v666_v15 = vld [vmem:[%s166_s24 + $0x38] sm:$0xff] }
  0x13   : > { %997 = vmatprep.subr.bf16.mxu0 %v996_v7  ;;  %v1020_v16 = vpack.c.bf16 %v666_v15, %v665_v14 }
  0x14   : > { %999 = vmatpush3.bf16.msra.mxu0 %v996_v7 }
  0x15   : > { %1005 = vmatprep.subr.bf16.mxu0 %v1004_v9 }
  0x17   : > { %945 = vmatmul.mubr.msk.f32.vlgmr.msra.gmra.mrb[0].mxu0 %vm180_vm0, %v175_v12 }
  0x18   : > { %1007 = vmatpush3.bf16.msra.mxu0 %v1004_v9  ;;  %958 = vmatprep.mubr.msk.f32.mxu0 %vm180_vm0, %v174_v0 }
  0x19   : > { %1013 = vmatprep.subr.bf16.mxu0 %v1012_v13 }
  0x1b   : > { %959 = vmatmul.mubr.msk.f32.vlgmr.msra.gmra.mrb[2].mxu0 %vm180_vm0, %v175_v12 }
  0x1c   : > { %1015 = vmatpush3.bf16.msra.mxu0 %v1012_v13  ;;  %972 = vmatprep.mubr.msk.f32.mxu0 %vm180_vm0, %v174_v0 }
  0x1d   : > { %1021 = vmatprep.subr.bf16.mxu0 %v1020_v16 }
  0x1f   : > { %973 = vmatmul.mubr.msk.f32.vlgmr.msra.gmra.mrb[4].mxu0 %vm180_vm0, %v175_v12 }
  0x20   : > { %1023 = vmatpush3.bf16.msra.mxu0 %v1020_v16  ;;  %986 = vmatprep.mubr.msk.f32.mxu0 %vm180_vm0, %v174_v0 }
  0x23   : > { %987 = vmatmul.mubr.msk.f32.vlgmr.msra.gmra.mrb[6].mxu0 %vm180_vm0, %v175_v12 }
  0xea   : > { %v946_v17 = vpop.f32.mrb[0].mxu0 }
  0xeb   : > { %v253_v18 = vpop.f32.mrb[1].mxu0 }
  0xec   : > { %951 = vmatprep.mubr.msk.f32.mxu1 %vm180_vm0, %v253_v18 }
  0xed   : > { %952 = vmatmul.mubr.msk.f32.vlgmr.msra.gmra.mrb[0].mxu1 %vm180_vm0, %v946_v17 }
  0xee   : > { %v960_v19 = vpop.f32.mrb[2].mxu0  ;;  %1011 = vmatpush3.bf16.msra.mxu1 %v1000_v3 }
  0xef   : > { %v413_v20 = vpop.f32.mrb[3].mxu0  ;;  %1017 = vmatprep.subr.bf16.mxu1 %v1000_v3 }
  0xf0   : > { %965 = vmatprep.mubr.msk.f32.mxu1 %vm180_vm0, %v413_v20 }
  0xf1   : > { %966 = vmatmul.mubr.msk.f32.vlgmr.msra.gmra.mrb[2].mxu1 %vm180_vm0, %v960_v19 }
  0xf2   : > { %v974_v21 = vpop.f32.mrb[4].mxu0  ;;  %1019 = vmatpush3.bf16.msra.mxu1 %v1000_v3 }
  0xf3   : > { %v573_v22 = vpop.f32.mrb[5].mxu0  ;;  %1025 = vmatprep.subr.bf16.mxu1 %v1000_v3 }
  0xf4   : > { %979 = vmatprep.mubr.msk.f32.mxu1 %vm180_vm0, %v573_v22 }
  0xf5   : > { %980 = vmatmul.mubr.msk.f32.vlgmr.msra.gmra.mrb[4].mxu1 %vm180_vm0, %v974_v21 }
  0xf6   : > { %v988_v23 = vpop.f32.mrb[6].mxu0  ;;  %1027 = vmatpush3.bf16.msra.mxu1 %v1000_v3 }
  0xf7   : > { %v733_v24 = vpop.f32.mrb[7].mxu0 }
  0xf8   : > { %993 = vmatprep.mubr.msk.f32.mxu1 %vm180_vm0, %v733_v24 }
  0xf9   : > { %994 = vmatmul.mubr.msk.f32.vlgmr.msra.gmra.mrb[6].mxu1 %vm180_vm0, %v988_v23 }
 0x1c0   : > { %v953_v25 = vpop.f32.mrb[0].mxu1 }
 0x1c1   : > { %344 = vst.msk [vmem:[%s172_s29 + $0x8] sm:$0xff] %vm180_vm0, %v953_v25  ;;  %v334_v26 = vpop.f32.mrb[1].mxu1 }
 0x1c2   : > { %343 = vst.msk [vmem:[%s172_s29] sm:$0xff] %vm180_vm0, %v334_v26 }
 0x1c4   : > { %v967_v27 = vpop.f32.mrb[2].mxu1 }
 0x1c5   : > { %504 = vst.msk [vmem:[%s172_s29 + $0x18] sm:$0xff] %vm180_vm0, %v967_v27  ;;  %v494_v28 = vpop.f32.mrb[3].mxu1 }
 0x1c6   : > { %503 = vst.msk [vmem:[%s172_s29 + $0x10] sm:$0xff] %vm180_vm0, %v494_v28 }
 0x1c8   : > { %v981_v29 = vpop.f32.mrb[4].mxu1 }
 0x1c9   : > { %664 = vst.msk [vmem:[%s172_s29 + $0x28] sm:$0xff] %vm180_vm0, %v981_v29  ;;  %v654_v30 = vpop.f32.mrb[5].mxu1 }
 0x1ca   : > { %663 = vst.msk [vmem:[%s172_s29 + $0x20] sm:$0xff] %vm180_vm0, %v654_v30 }
 0x1cc   : > { %v995_v31 = vpop.f32.mrb[6].mxu1 }
 0x1cd   : > { %824 = vst.msk [vmem:[%s172_s29 + $0x38] sm:$0xff] %vm180_vm0, %v995_v31  ;;  %v814_v32 = vpop.f32.mrb[7].mxu1 }
 0x1ce   : > { %823 = vst.msk [vmem:[%s172_s29 + $0x30] sm:$0xff] %vm180_vm0, %v814_v32 }
 0x1cf PF: > { %s13_s12 = sadd.s32 1, %s1042_s12  }
 0x1d0   : > { %p10_p4 = scmp.ge.s32.totalorder %s13_s12, 4  }
 0x1d2   :  { %12 = sbr.rel (!%p10_p4) target bundleno = 1 (0x1), region = 62 }

</bundles_post_ra>
